<compile_context>
chip_gen: v6e
topology: v6e:2x2x1
jax: 0.10.0
libtpu: 0.0.40
codegen_flags: <defaults>
</compile_context>

<pallas_src>
import functools

import numpy as np

import jax
import jax.numpy as jnp
from jax.experimental import pallas as pl
from jax.experimental.pallas import tpu as pltpu


# ----------------------------------------------------------------------------
# Fused kernel: [GATConv]*L -> global_mean_pool -> (Linear -> ReLU)*M
# ----------------------------------------------------------------------------
def _fused_multigat_kernel(*refs, gat_cfg, n_lin):
    """refs = [x0, adj_int8, pool,
               (w, a_dst, a_src, head_masks, bias) per GAT layer,
               (w, b) per Linear layer,
               out_ref]"""
    n_gat = len(gat_cfg)
    x_ref, adj_ref, pool_ref = refs[0], refs[1], refs[2]
    gat_refs = refs[3:3 + 5 * n_gat]
    lin_refs = refs[3 + 5 * n_gat:3 + 5 * n_gat + 2 * n_lin]
    out_ref = refs[-1]

    # Additive edge mask (0 on edges / self loops, -1e30 elsewhere) built ONCE
    # from the compact int8 adjacency; reused by every head of every layer.
    adj_f = adj_ref[...].astype(jnp.float32)                  # (N, N)
    maskb = jnp.where(adj_f > 0.5, 0.0, -1e30)                # (N, N) f32

    h = x_ref[...]                                            # (N, F_in) f32
    n_nodes = h.shape[0]

    for l, (heads, out_ch) in enumerate(gat_cfg):
        w_ref, adst_ref, asrc_ref, hmask_ref, bias_ref = gat_refs[5 * l:5 * l + 5]
        hc = heads * out_ch

        # Main linear transform for all heads: (N, F_in) @ (F_in, H*C) on the
        # MXU, bf16 inputs / f32 accumulation.
        xp = jnp.dot(h.astype(jnp.bfloat16),
                     w_ref[...].astype(jnp.bfloat16),
                     preferred_element_type=jnp.float32)      # (N, H*C) f32
        xp_bf = xp.astype(jnp.bfloat16)

        # Attention scores for ALL heads with one bf16 matmul per direction
        # (block-diagonal projections built with numpy in the wrapper):
        #   dst_scores[n, h] = <att_dst_h, xp_h[n]>   (column orientation)
        #   src_scores[h, n] = <att_src_h, xp_h[n]>   (row oriented: no
        #                                              in-kernel transpose)
        dst_scores = jnp.dot(xp_bf, adst_ref[...],
                             preferred_element_type=jnp.float32)    # (N, H)
        src_scores = jax.lax.dot_general(
            asrc_ref[...], xp_bf, (((1,), (1,)), ((), ())),
            preferred_element_type=jnp.float32)                     # (H, N)

        # Layer output accumulated as a single lane-dense (N, H*C) value.
        h_new = jnp.zeros((n_nodes, hc), jnp.float32) + bias_ref[...]

        def head_update(h_acc, dcol, srow, hm_bf,
                        maskb=maskb, xp_bf=xp_bf):
            # e[i, j] = LeakyReLU(alpha_dst[i] + alpha_src[j], 0.2), masked.
            e = dcol + srow                                   # (N, N)
            e = jnp.maximum(e, 0.2 * e)                       # LeakyReLU(0.2)
            e = e + maskb
            # Online-stable softmax pieces; the divide is folded PAST the
            # aggregation matmul (row scaling commutes with the right-matmul),
            # so p is cast to bf16 unnormalized.  Self loops guarantee
            # denom >= 1, so no NaN / zero-denominator risk.
            m = jnp.max(e, axis=-1, keepdims=True)
            p = jnp.exp(e - m)
            inv = pl.reciprocal(jnp.sum(p, axis=-1, keepdims=True),
                                approx=True)                  # (N, 1) on EUP
            # Weighted aggregation on the MXU (bf16 in / f32 acc).  The rhs is
            # xp with the other heads' feature columns zeroed (lane-dense, no
            # narrow column-slice stores); at H*C <= 128 lanes this costs the
            # same MXU work as a per-head slice.
            agg = jnp.dot(p.astype(jnp.bfloat16), xp_bf * hm_bf,
                          preferred_element_type=jnp.float32)  # (N, H*C)
            return h_acc + inv * agg

        if heads <= 4:
            # Static unroll for small head counts.
            for hd in range(heads):
                h_new = head_update(h_new,
                                    dst_scores[:, hd:hd + 1],
                                    src_scores[hd:hd + 1, :],
                                    hmask_ref[hd:hd + 1, :])
        else:
            # Many heads: fori_loop bounds the live set to one head's (N, N)
            # temporaries (static unroll would keep several live at once).
            def body(hd, h_acc):
                dcol = jax.lax.dynamic_slice_in_dim(dst_scores, hd, 1, axis=1)
                srow = jax.lax.dynamic_slice_in_dim(src_scores, hd, 1, axis=0)
                hm = hmask_ref[pl.ds(hd, 1), :]
                return head_update(h_acc, dcol, srow, hm)
            h_new = jax.lax.fori_loop(0, heads, body, h_new)

        h = h_new                                             # (N, H*C) f32

    # global_mean_pool: (B, N) @ (N, F) -> (B, F).
    pooled = jnp.dot(pool_ref[...], h, preferred_element_type=jnp.float32)
    # dropout(p=0.2) is identity in eval mode.
    for l in range(n_lin):
        w = lin_refs[2 * l][...]
        b = lin_refs[2 * l + 1][...]
        pooled = jnp.dot(pooled, w, preferred_element_type=jnp.float32) + b
        pooled = jnp.maximum(pooled, 0.0)     # relu after every linear layer
    out_ref[...] = pooled.astype(out_ref.dtype)


# ----------------------------------------------------------------------------
# Parameter packing (numpy, outside the traced path)
# ----------------------------------------------------------------------------
def pack_gat_params(gat_params):
    """Build block-diagonal score projections / head masks once with numpy."""
    packed = []
    for p in gat_params:
        heads, out_ch = p["heads"], p["out_ch"]
        hc = heads * out_ch
        att_dst = np.asarray(p["att_dst"], np.float32)
        att_src = np.asarray(p["att_src"], np.float32)
        a_dst = np.zeros((hc, heads), np.float32)
        a_src = np.zeros((heads, hc), np.float32)
        hmask = np.zeros((heads, hc), np.float32)
        for h in range(heads):
            a_dst[h * out_ch:(h + 1) * out_ch, h] = att_dst[h]
            a_src[h, h * out_ch:(h + 1) * out_ch] = att_src[h]
            hmask[h, h * out_ch:(h + 1) * out_ch] = 1.0
        packed.append(dict(
            w=jnp.asarray(p["w"], jnp.float32),
            a_dst=jnp.asarray(a_dst, jnp.bfloat16),
            a_src=jnp.asarray(a_src, jnp.bfloat16),
            hmask=jnp.asarray(hmask, jnp.bfloat16),
            bias=jnp.asarray(p["bias"], jnp.float32),
            heads=heads, out_ch=out_ch))
    return packed


# ----------------------------------------------------------------------------
# Wrapper: builds the kernel operands and issues one pallas_call
# ----------------------------------------------------------------------------
def multigat_forward(pos, x, adj_int8, pool_mat, packed_gat, lin_params):
    """Full MultiGat forward (eval mode, labels=None) as one fused kernel.

    adj_int8: (N, N) int8 adjacency adj[dst, src], MUST contain self loops
              (GATConv add_self_loops=True).
    """
    x0 = jnp.concatenate([pos, x], axis=1)             # cat([pos, x], dim=1)

    args = [x0, adj_int8, pool_mat]
    gat_cfg = []
    for p in packed_gat:
        args += [p["w"], p["a_dst"], p["a_src"], p["hmask"], p["bias"]]
        gat_cfg.append((p["heads"], p["out_ch"]))
    for w, b in lin_params:
        args += [w, b]

    n_graphs = pool_mat.shape[0]
    n_classes = lin_params[-1][0].shape[1]
    n_nodes = x0.shape[0]
    hc_max = max(h * c for h, c in gat_cfg)
    f_max = max([x0.shape[1], hc_max] + [w.shape[1] for w, _ in lin_params])

    # VMEM budget from the actual live set (int8 adj + f32 mask + per-head
    # (N,N) e/p temporaries + xp/xp_bf/h/h_new + params), with 2x headroom,
    # floored at 32 MiB and capped at 64 MiB so it is valid on v7x as well as
    # v5e/v6e.
    param_bytes = sum(int(a.size) * a.dtype.itemsize for a in args)
    live = (n_nodes * n_nodes * (1 + 4 + 3 * 4)
            + n_nodes * f_max * (4 + 2 + 4 + 4)
            + param_bytes)
    vmem_limit = int(min(max(2 * live, 32 << 20), 64 << 20))

    kernel = functools.partial(_fused_multigat_kernel,
                               gat_cfg=tuple(gat_cfg), n_lin=len(lin_params))
    return pl.pallas_call(
        kernel,
        out_shape=jax.ShapeDtypeStruct((n_graphs, n_classes), jnp.float32),
        in_specs=[pl.BlockSpec(memory_space=pltpu.MemorySpace.VMEM)] * len(args),
        out_specs=pl.BlockSpec(memory_space=pltpu.MemorySpace.VMEM),
        compiler_params=pltpu.CompilerParams(vmem_limit_bytes=vmem_limit),
    )(*args)


# ----------------------------------------------------------------------------
# Parameter construction (deterministic, synthetic)
# ----------------------------------------------------------------------------
def glorot(key, shape):
    fan_in, fan_out = shape[0], shape[-1]
    lim = (6.0 / (fan_in + fan_out)) ** 0.5
    return jax.random.uniform(key, shape, jnp.float32, -lim, lim)


def build_params(key, num_node_features, hidden_sizes, num_heads,
                 intermediate_sizes, num_classes):
    gat_sizes = [num_node_features] + list(hidden_sizes)
    head_mul = [1] + list(num_heads[1:])          # as written in the module
    gat_params = []
    for cin, cout, h, hm in zip(gat_sizes[:-1], gat_sizes[1:],
                                num_heads, head_mul):
        key, k1, k2, k3 = jax.random.split(key, 4)
        in_ch = cin * hm
        gat_params.append(dict(
            w=glorot(k1, (in_ch, h * cout)),      # GATConv lin has no bias
            att_src=glorot(k2, (h, cout)),
            att_dst=glorot(k3, (h, cout)),
            bias=jnp.zeros((1, h * cout), jnp.float32),
            heads=h, out_ch=cout))

    lin_sizes = ([gat_sizes[-1] * num_heads[-1]] + list(intermediate_sizes)
                 + [num_classes])
    lin_params = []
    for fin, fout in zip(lin_sizes[:-1], lin_sizes[1:]):
        key, k1, k2 = jax.random.split(key, 3)
        lim = 1.0 / (fin ** 0.5)
        w = jax.random.uniform(k1, (fin, fout), jnp.float32, -lim, lim)
        b = jax.random.uniform(k2, (1, fout), jnp.float32, -lim, lim)
        lin_params.append((w, b))
    return gat_params, lin_params


# ----------------------------------------------------------------------------
if __name__ == "__main__":
    key = jax.random.PRNGKey(0)

    # Small synthetic graph batch: 2 graphs x 8 nodes = 16 nodes.
    N, B = 16, 2
    POS_DIM, FEAT_DIM = 3, 5                      # num_node_features = 8
    HIDDEN = [16, 16]
    HEADS = [2, 2]
    INTER = [32]
    NUM_CLASSES = 4

    key, kp, kx, kw = jax.random.split(key, 4)
    pos = jax.random.normal(kp, (N, POS_DIM), jnp.float32)
    x = jax.random.normal(kx, (N, FEAT_DIM), jnp.float32)
    batch = jnp.array([0] * 8 + [1] * 8, jnp.int32)

    # Ring edges (both directions) inside each graph -> edge_index (2, 32).
    src, dst = [], []
    for g in range(B):
        base = g * 8
        for i in range(8):
            a, b = base + i, base + (i + 1) % 8
            src += [a, b]
            dst += [b, a]
    edge_index = jnp.array([src, dst], jnp.int32)

    # Dense adjacency adj[dst, src] WITH self loops (GATConv default); the
    # self loops guarantee every softmax row has at least one valid entry.
    # Passed to the kernel as compact int8.
    adj = jnp.zeros((N, N), jnp.float32)
    adj = adj.at[edge_index[1], edge_index[0]].set(1.0)
    adj = jnp.maximum(adj, jnp.eye(N, dtype=jnp.float32))
    adj_int8 = (adj > 0).astype(jnp.int8)

    # Mean-pool matrix (B, N).
    onehot = (batch[None, :] == jnp.arange(B)[:, None]).astype(jnp.float32)
    pool_mat = onehot / jnp.sum(onehot, axis=1, keepdims=True)

    gat_params, lin_params = build_params(
        kw, POS_DIM + FEAT_DIM, HIDDEN, HEADS, INTER, NUM_CLASSES)
    packed_gat = pack_gat_params(gat_params)      # numpy packing, once

    out = multigat_forward(pos, x, adj_int8, pool_mat, packed_gat, lin_params)
    out = jax.block_until_ready(out)
    assert out.shape == (B, NUM_CLASSES)
    print("KERNEL_OK")
</pallas_src>

<mosaic_0001>
module attributes {stable_mosaic.version = 11 : i64} {
  func.func @_fused_multigat_kernel(%arg0: memref<16x8xf32, #tpu.memory_space<vmem>>, %arg1: memref<16x16xi8, #tpu.memory_space<vmem>>, %arg2: memref<2x16xf32, #tpu.memory_space<vmem>>, %arg3: memref<8x32xf32, #tpu.memory_space<vmem>>, %arg4: memref<32x2xbf16, #tpu.memory_space<vmem>>, %arg5: memref<2x32xbf16, #tpu.memory_space<vmem>>, %arg6: memref<2x32xbf16, #tpu.memory_space<vmem>>, %arg7: memref<1x32xf32, #tpu.memory_space<vmem>>, %arg8: memref<32x32xf32, #tpu.memory_space<vmem>>, %arg9: memref<32x2xbf16, #tpu.memory_space<vmem>>, %arg10: memref<2x32xbf16, #tpu.memory_space<vmem>>, %arg11: memref<2x32xbf16, #tpu.memory_space<vmem>>, %arg12: memref<1x32xf32, #tpu.memory_space<vmem>>, %arg13: memref<32x32xf32, #tpu.memory_space<vmem>>, %arg14: memref<1x32xf32, #tpu.memory_space<vmem>>, %arg15: memref<32x4xf32, #tpu.memory_space<vmem>>, %arg16: memref<1x4xf32, #tpu.memory_space<vmem>>, %arg17: memref<2x4xf32, #tpu.memory_space<vmem>>) attributes {dimension_semantics = [], scalar_prefetch = 0 : i64, scratch_operands = 0 : i64, tpu.core_type = #tpu.core_type<tc>} {
    %c0 = arith.constant 0 : index
    %c0_0 = arith.constant 0 : index
    %0 = vector.load %arg1[%c0, %c0_0] : memref<16x16xi8, #tpu.memory_space<vmem>>, vector<16x16xi8>
    %1 = arith.sitofp %0 : vector<16x16xi8> to vector<16x16xf32>
    %cst = arith.constant 5.000000e-01 : f32
    %2 = vector.broadcast %cst : f32 to vector<16x16xf32>
    %3 = arith.cmpf ogt, %1, %2 : vector<16x16xf32>
    %cst_1 = arith.constant 0.000000e+00 : f32
    %cst_2 = arith.constant -1.000000e+30 : f32
    %4 = vector.broadcast %cst_1 : f32 to vector<16x16xf32>
    %5 = vector.broadcast %cst_2 : f32 to vector<16x16xf32>
    %6 = arith.select %3, %4, %5 : vector<16x16xi1>, vector<16x16xf32>
    %c0_3 = arith.constant 0 : index
    %c0_4 = arith.constant 0 : index
    %7 = vector.load %arg0[%c0_3, %c0_4] : memref<16x8xf32, #tpu.memory_space<vmem>>, vector<16x8xf32>
    %8 = arith.truncf %7 : vector<16x8xf32> to vector<16x8xbf16>
    %c0_5 = arith.constant 0 : index
    %c0_6 = arith.constant 0 : index
    %9 = vector.load %arg3[%c0_5, %c0_6] : memref<8x32xf32, #tpu.memory_space<vmem>>, vector<8x32xf32>
    %10 = arith.truncf %9 : vector<8x32xf32> to vector<8x32xbf16>
    %cst_7 = arith.constant dense<0.000000e+00> : vector<16x32xf32>
    %11 = tpu.matmul %8, %10, %cst_7 {dimension_numbers = #tpu.dot_dimension_numbers<[1], [0], [0], [1], [0, 0, 1, 1], [], []>} : vector<16x8xbf16>, vector<8x32xbf16>, vector<16x32xf32> -> vector<16x32xf32>
    %12 = arith.truncf %11 : vector<16x32xf32> to vector<16x32xbf16>
    %c0_8 = arith.constant 0 : index
    %c0_9 = arith.constant 0 : index
    %13 = vector.load %arg4[%c0_8, %c0_9] : memref<32x2xbf16, #tpu.memory_space<vmem>>, vector<32x2xbf16>
    %cst_10 = arith.constant dense<0.000000e+00> : vector<16x2xf32>
    %14 = tpu.matmul %12, %13, %cst_10 {dimension_numbers = #tpu.dot_dimension_numbers<[1], [0], [0], [1], [0, 0, 1, 1], [], []>} : vector<16x32xbf16>, vector<32x2xbf16>, vector<16x2xf32> -> vector<16x2xf32>
    %c0_11 = arith.constant 0 : index
    %c0_12 = arith.constant 0 : index
    %15 = vector.load %arg5[%c0_11, %c0_12] : memref<2x32xbf16, #tpu.memory_space<vmem>>, vector<2x32xbf16>
    %cst_13 = arith.constant dense<0.000000e+00> : vector<2x16xf32>
    %16 = tpu.matmul %15, %12, %cst_13 {dimension_numbers = #tpu.dot_dimension_numbers<[1], [1], [0], [0], [0, 0, 1, 0], [], []>} : vector<2x32xbf16>, vector<16x32xbf16>, vector<2x16xf32> -> vector<2x16xf32>
    %cst_14 = arith.constant 0.000000e+00 : f32
    %17 = vector.broadcast %cst_14 : f32 to vector<16x32xf32>
    %c0_15 = arith.constant 0 : index
    %c0_16 = arith.constant 0 : index
    %18 = vector.load %arg7[%c0_15, %c0_16] : memref<1x32xf32, #tpu.memory_space<vmem>>, vector<1x32xf32>
    %19 = vector.broadcast %18 : vector<1x32xf32> to vector<16x32xf32>
    %20 = arith.addf %17, %19 : vector<16x32xf32>
    %21 = vector.extract_strided_slice %14 {offsets = [0, 0], sizes = [16, 1], strides = [1, 1]} : vector<16x2xf32> to vector<16x1xf32>
    %22 = vector.extract_strided_slice %16 {offsets = [0, 0], sizes = [1, 16], strides = [1, 1]} : vector<2x16xf32> to vector<1x16xf32>
    %c0_17 = arith.constant 0 : index
    %c0_18 = arith.constant 0 : index
    %23 = vector.load %arg6[%c0_17, %c0_18] : memref<2x32xbf16, #tpu.memory_space<vmem>>, vector<1x32xbf16>
    %24 = vector.broadcast %21 : vector<16x1xf32> to vector<16x16xf32>
    %25 = vector.broadcast %22 : vector<1x16xf32> to vector<16x16xf32>
    %26 = arith.addf %24, %25 : vector<16x16xf32>
    %cst_19 = arith.constant 2.000000e-01 : f32
    %27 = vector.broadcast %cst_19 : f32 to vector<16x16xf32>
    %28 = arith.mulf %27, %26 : vector<16x16xf32>
    %29 = arith.maximumf %26, %28 : vector<16x16xf32>
    %30 = arith.addf %29, %6 : vector<16x16xf32>
    %cst_20 = arith.constant dense<0xFF800000> : vector<16xf32>
    %31 = vector.multi_reduction <maximumf>, %30, %cst_20 [1] : vector<16x16xf32> to vector<16xf32>
    %32 = vector.shape_cast %31 : vector<16xf32> to vector<16x1xf32>
    %33 = vector.broadcast %32 : vector<16x1xf32> to vector<16x16xf32>
    %34 = arith.subf %30, %33 : vector<16x16xf32>
    %35 = math.exp %34 : vector<16x16xf32>
    %cst_21 = arith.constant dense<0.000000e+00> : vector<16xf32>
    %36 = vector.multi_reduction <add>, %35, %cst_21 [1] : vector<16x16xf32> to vector<16xf32>
    %37 = vector.shape_cast %36 : vector<16xf32> to vector<16x1xf32>
    %38 = tpu.reciprocal %37 {approx = true} : vector<16x1xf32> -> vector<16x1xf32>
    %39 = arith.truncf %35 : vector<16x16xf32> to vector<16x16xbf16>
    %40 = vector.broadcast %23 : vector<1x32xbf16> to vector<16x32xbf16>
    %41 = arith.mulf %12, %40 : vector<16x32xbf16>
    %cst_22 = arith.constant dense<0.000000e+00> : vector<16x32xf32>
    %42 = tpu.matmul %39, %41, %cst_22 {dimension_numbers = #tpu.dot_dimension_numbers<[1], [0], [0], [1], [0, 0, 1, 1], [], []>} : vector<16x16xbf16>, vector<16x32xbf16>, vector<16x32xf32> -> vector<16x32xf32>
    %43 = vector.broadcast %38 : vector<16x1xf32> to vector<16x32xf32>
    %44 = arith.mulf %43, %42 : vector<16x32xf32>
    %45 = arith.addf %20, %44 : vector<16x32xf32>
    %46 = vector.extract_strided_slice %14 {offsets = [0, 1], sizes = [16, 1], strides = [1, 1]} : vector<16x2xf32> to vector<16x1xf32>
    %47 = vector.extract_strided_slice %16 {offsets = [1, 0], sizes = [1, 16], strides = [1, 1]} : vector<2x16xf32> to vector<1x16xf32>
    %c1 = arith.constant 1 : index
    %c0_23 = arith.constant 0 : index
    %48 = vector.load %arg6[%c1, %c0_23] : memref<2x32xbf16, #tpu.memory_space<vmem>>, vector<1x32xbf16>
    %49 = vector.broadcast %46 : vector<16x1xf32> to vector<16x16xf32>
    %50 = vector.broadcast %47 : vector<1x16xf32> to vector<16x16xf32>
    %51 = arith.addf %49, %50 : vector<16x16xf32>
    %cst_24 = arith.constant 2.000000e-01 : f32
    %52 = vector.broadcast %cst_24 : f32 to vector<16x16xf32>
    %53 = arith.mulf %52, %51 : vector<16x16xf32>
    %54 = arith.maximumf %51, %53 : vector<16x16xf32>
    %55 = arith.addf %54, %6 : vector<16x16xf32>
    %cst_25 = arith.constant dense<0xFF800000> : vector<16xf32>
    %56 = vector.multi_reduction <maximumf>, %55, %cst_25 [1] : vector<16x16xf32> to vector<16xf32>
    %57 = vector.shape_cast %56 : vector<16xf32> to vector<16x1xf32>
    %58 = vector.broadcast %57 : vector<16x1xf32> to vector<16x16xf32>
    %59 = arith.subf %55, %58 : vector<16x16xf32>
    %60 = math.exp %59 : vector<16x16xf32>
    %cst_26 = arith.constant dense<0.000000e+00> : vector<16xf32>
    %61 = vector.multi_reduction <add>, %60, %cst_26 [1] : vector<16x16xf32> to vector<16xf32>
    %62 = vector.shape_cast %61 : vector<16xf32> to vector<16x1xf32>
    %63 = tpu.reciprocal %62 {approx = true} : vector<16x1xf32> -> vector<16x1xf32>
    %64 = arith.truncf %60 : vector<16x16xf32> to vector<16x16xbf16>
    %65 = vector.broadcast %48 : vector<1x32xbf16> to vector<16x32xbf16>
    %66 = arith.mulf %12, %65 : vector<16x32xbf16>
    %cst_27 = arith.constant dense<0.000000e+00> : vector<16x32xf32>
    %67 = tpu.matmul %64, %66, %cst_27 {dimension_numbers = #tpu.dot_dimension_numbers<[1], [0], [0], [1], [0, 0, 1, 1], [], []>} : vector<16x16xbf16>, vector<16x32xbf16>, vector<16x32xf32> -> vector<16x32xf32>
    %68 = vector.broadcast %63 : vector<16x1xf32> to vector<16x32xf32>
    %69 = arith.mulf %68, %67 : vector<16x32xf32>
    %70 = arith.addf %45, %69 : vector<16x32xf32>
    %71 = arith.truncf %70 : vector<16x32xf32> to vector<16x32xbf16>
    %c0_28 = arith.constant 0 : index
    %c0_29 = arith.constant 0 : index
    %72 = vector.load %arg8[%c0_28, %c0_29] : memref<32x32xf32, #tpu.memory_space<vmem>>, vector<32x32xf32>
    %73 = arith.truncf %72 : vector<32x32xf32> to vector<32x32xbf16>
    %cst_30 = arith.constant dense<0.000000e+00> : vector<16x32xf32>
    %74 = tpu.matmul %71, %73, %cst_30 {dimension_numbers = #tpu.dot_dimension_numbers<[1], [0], [0], [1], [0, 0, 1, 1], [], []>} : vector<16x32xbf16>, vector<32x32xbf16>, vector<16x32xf32> -> vector<16x32xf32>
    %75 = arith.truncf %74 : vector<16x32xf32> to vector<16x32xbf16>
    %c0_31 = arith.constant 0 : index
    %c0_32 = arith.constant 0 : index
    %76 = vector.load %arg9[%c0_31, %c0_32] : memref<32x2xbf16, #tpu.memory_space<vmem>>, vector<32x2xbf16>
    %cst_33 = arith.constant dense<0.000000e+00> : vector<16x2xf32>
    %77 = tpu.matmul %75, %76, %cst_33 {dimension_numbers = #tpu.dot_dimension_numbers<[1], [0], [0], [1], [0, 0, 1, 1], [], []>} : vector<16x32xbf16>, vector<32x2xbf16>, vector<16x2xf32> -> vector<16x2xf32>
    %c0_34 = arith.constant 0 : index
    %c0_35 = arith.constant 0 : index
    %78 = vector.load %arg10[%c0_34, %c0_35] : memref<2x32xbf16, #tpu.memory_space<vmem>>, vector<2x32xbf16>
    %cst_36 = arith.constant dense<0.000000e+00> : vector<2x16xf32>
    %79 = tpu.matmul %78, %75, %cst_36 {dimension_numbers = #tpu.dot_dimension_numbers<[1], [1], [0], [0], [0, 0, 1, 0], [], []>} : vector<2x32xbf16>, vector<16x32xbf16>, vector<2x16xf32> -> vector<2x16xf32>
    %cst_37 = arith.constant 0.000000e+00 : f32
    %80 = vector.broadcast %cst_37 : f32 to vector<16x32xf32>
    %c0_38 = arith.constant 0 : index
    %c0_39 = arith.constant 0 : index
    %81 = vector.load %arg12[%c0_38, %c0_39] : memref<1x32xf32, #tpu.memory_space<vmem>>, vector<1x32xf32>
    %82 = vector.broadcast %81 : vector<1x32xf32> to vector<16x32xf32>
    %83 = arith.addf %80, %82 : vector<16x32xf32>
    %84 = vector.extract_strided_slice %77 {offsets = [0, 0], sizes = [16, 1], strides = [1, 1]} : vector<16x2xf32> to vector<16x1xf32>
    %85 = vector.extract_strided_slice %79 {offsets = [0, 0], sizes = [1, 16], strides = [1, 1]} : vector<2x16xf32> to vector<1x16xf32>
    %c0_40 = arith.constant 0 : index
    %c0_41 = arith.constant 0 : index
    %86 = vector.load %arg11[%c0_40, %c0_41] : memref<2x32xbf16, #tpu.memory_space<vmem>>, vector<1x32xbf16>
    %87 = vector.broadcast %84 : vector<16x1xf32> to vector<16x16xf32>
    %88 = vector.broadcast %85 : vector<1x16xf32> to vector<16x16xf32>
    %89 = arith.addf %87, %88 : vector<16x16xf32>
    %cst_42 = arith.constant 2.000000e-01 : f32
    %90 = vector.broadcast %cst_42 : f32 to vector<16x16xf32>
    %91 = arith.mulf %90, %89 : vector<16x16xf32>
    %92 = arith.maximumf %89, %91 : vector<16x16xf32>
    %93 = arith.addf %92, %6 : vector<16x16xf32>
    %cst_43 = arith.constant dense<0xFF800000> : vector<16xf32>
    %94 = vector.multi_reduction <maximumf>, %93, %cst_43 [1] : vector<16x16xf32> to vector<16xf32>
    %95 = vector.shape_cast %94 : vector<16xf32> to vector<16x1xf32>
    %96 = vector.broadcast %95 : vector<16x1xf32> to vector<16x16xf32>
    %97 = arith.subf %93, %96 : vector<16x16xf32>
    %98 = math.exp %97 : vector<16x16xf32>
    %cst_44 = arith.constant dense<0.000000e+00> : vector<16xf32>
    %99 = vector.multi_reduction <add>, %98, %cst_44 [1] : vector<16x16xf32> to vector<16xf32>
    %100 = vector.shape_cast %99 : vector<16xf32> to vector<16x1xf32>
    %101 = tpu.reciprocal %100 {approx = true} : vector<16x1xf32> -> vector<16x1xf32>
    %102 = arith.truncf %98 : vector<16x16xf32> to vector<16x16xbf16>
    %103 = vector.broadcast %86 : vector<1x32xbf16> to vector<16x32xbf16>
    %104 = arith.mulf %75, %103 : vector<16x32xbf16>
    %cst_45 = arith.constant dense<0.000000e+00> : vector<16x32xf32>
    %105 = tpu.matmul %102, %104, %cst_45 {dimension_numbers = #tpu.dot_dimension_numbers<[1], [0], [0], [1], [0, 0, 1, 1], [], []>} : vector<16x16xbf16>, vector<16x32xbf16>, vector<16x32xf32> -> vector<16x32xf32>
    %106 = vector.broadcast %101 : vector<16x1xf32> to vector<16x32xf32>
    %107 = arith.mulf %106, %105 : vector<16x32xf32>
    %108 = arith.addf %83, %107 : vector<16x32xf32>
    %109 = vector.extract_strided_slice %77 {offsets = [0, 1], sizes = [16, 1], strides = [1, 1]} : vector<16x2xf32> to vector<16x1xf32>
    %110 = vector.extract_strided_slice %79 {offsets = [1, 0], sizes = [1, 16], strides = [1, 1]} : vector<2x16xf32> to vector<1x16xf32>
    %c1_46 = arith.constant 1 : index
    %c0_47 = arith.constant 0 : index
    %111 = vector.load %arg11[%c1_46, %c0_47] : memref<2x32xbf16, #tpu.memory_space<vmem>>, vector<1x32xbf16>
    %112 = vector.broadcast %109 : vector<16x1xf32> to vector<16x16xf32>
    %113 = vector.broadcast %110 : vector<1x16xf32> to vector<16x16xf32>
    %114 = arith.addf %112, %113 : vector<16x16xf32>
    %cst_48 = arith.constant 2.000000e-01 : f32
    %115 = vector.broadcast %cst_48 : f32 to vector<16x16xf32>
    %116 = arith.mulf %115, %114 : vector<16x16xf32>
    %117 = arith.maximumf %114, %116 : vector<16x16xf32>
    %118 = arith.addf %117, %6 : vector<16x16xf32>
    %cst_49 = arith.constant dense<0xFF800000> : vector<16xf32>
    %119 = vector.multi_reduction <maximumf>, %118, %cst_49 [1] : vector<16x16xf32> to vector<16xf32>
    %120 = vector.shape_cast %119 : vector<16xf32> to vector<16x1xf32>
    %121 = vector.broadcast %120 : vector<16x1xf32> to vector<16x16xf32>
    %122 = arith.subf %118, %121 : vector<16x16xf32>
    %123 = math.exp %122 : vector<16x16xf32>
    %cst_50 = arith.constant dense<0.000000e+00> : vector<16xf32>
    %124 = vector.multi_reduction <add>, %123, %cst_50 [1] : vector<16x16xf32> to vector<16xf32>
    %125 = vector.shape_cast %124 : vector<16xf32> to vector<16x1xf32>
    %126 = tpu.reciprocal %125 {approx = true} : vector<16x1xf32> -> vector<16x1xf32>
    %127 = arith.truncf %123 : vector<16x16xf32> to vector<16x16xbf16>
    %128 = vector.broadcast %111 : vector<1x32xbf16> to vector<16x32xbf16>
    %129 = arith.mulf %75, %128 : vector<16x32xbf16>
    %cst_51 = arith.constant dense<0.000000e+00> : vector<16x32xf32>
    %130 = tpu.matmul %127, %129, %cst_51 {dimension_numbers = #tpu.dot_dimension_numbers<[1], [0], [0], [1], [0, 0, 1, 1], [], []>} : vector<16x16xbf16>, vector<16x32xbf16>, vector<16x32xf32> -> vector<16x32xf32>
    %131 = vector.broadcast %126 : vector<16x1xf32> to vector<16x32xf32>
    %132 = arith.mulf %131, %130 : vector<16x32xf32>
    %133 = arith.addf %108, %132 : vector<16x32xf32>
    %c0_52 = arith.constant 0 : index
    %c0_53 = arith.constant 0 : index
    %134 = vector.load %arg2[%c0_52, %c0_53] : memref<2x16xf32, #tpu.memory_space<vmem>>, vector<2x16xf32>
    %cst_54 = arith.constant dense<0.000000e+00> : vector<2x32xf32>
    %135 = tpu.matmul %134, %133, %cst_54 {dimension_numbers = #tpu.dot_dimension_numbers<[1], [0], [0], [1], [0, 0, 1, 1], [], []>} : vector<2x16xf32>, vector<16x32xf32>, vector<2x32xf32> -> vector<2x32xf32>
    %c0_55 = arith.constant 0 : index
    %c0_56 = arith.constant 0 : index
    %136 = vector.load %arg13[%c0_55, %c0_56] : memref<32x32xf32, #tpu.memory_space<vmem>>, vector<32x32xf32>
    %c0_57 = arith.constant 0 : index
    %c0_58 = arith.constant 0 : index
    %137 = vector.load %arg14[%c0_57, %c0_58] : memref<1x32xf32, #tpu.memory_space<vmem>>, vector<1x32xf32>
    %cst_59 = arith.constant dense<0.000000e+00> : vector<2x32xf32>
    %138 = tpu.matmul %135, %136, %cst_59 {dimension_numbers = #tpu.dot_dimension_numbers<[1], [0], [0], [1], [0, 0, 1, 1], [], []>} : vector<2x32xf32>, vector<32x32xf32>, vector<2x32xf32> -> vector<2x32xf32>
    %139 = vector.broadcast %137 : vector<1x32xf32> to vector<2x32xf32>
    %140 = arith.addf %138, %139 : vector<2x32xf32>
    %cst_60 = arith.constant 0.000000e+00 : f32
    %141 = vector.broadcast %cst_60 : f32 to vector<2x32xf32>
    %142 = arith.maximumf %140, %141 : vector<2x32xf32>
    %c0_61 = arith.constant 0 : index
    %c0_62 = arith.constant 0 : index
    %143 = vector.load %arg15[%c0_61, %c0_62] : memref<32x4xf32, #tpu.memory_space<vmem>>, vector<32x4xf32>
    %c0_63 = arith.constant 0 : index
    %c0_64 = arith.constant 0 : index
    %144 = vector.load %arg16[%c0_63, %c0_64] : memref<1x4xf32, #tpu.memory_space<vmem>>, vector<1x4xf32>
    %cst_65 = arith.constant dense<0.000000e+00> : vector<2x4xf32>
    %145 = tpu.matmul %142, %143, %cst_65 {dimension_numbers = #tpu.dot_dimension_numbers<[1], [0], [0], [1], [0, 0, 1, 1], [], []>} : vector<2x32xf32>, vector<32x4xf32>, vector<2x4xf32> -> vector<2x4xf32>
    %146 = vector.broadcast %144 : vector<1x4xf32> to vector<2x4xf32>
    %147 = arith.addf %145, %146 : vector<2x4xf32>
    %cst_66 = arith.constant 0.000000e+00 : f32
    %148 = vector.broadcast %cst_66 : f32 to vector<2x4xf32>
    %149 = arith.maximumf %147, %148 : vector<2x4xf32>
    %c0_67 = arith.constant 0 : index
    %c0_68 = arith.constant 0 : index
    %150 = vector.load %arg17[%c0_67, %c0_68] : memref<2x4xf32, #tpu.memory_space<vmem>>, vector<2x4xf32>
    tpu.vector_store %arg17[%c0_67, %c0_68], %149 {strides = array<i32>} : memref<2x4xf32, #tpu.memory_space<vmem>>, vector<2x4xf32>,
    return
  }
}

</mosaic_0001>

<bundles_post_ra>
// kernel: tpu_custom_call.1
= control target key start
LH: loop header
LB: loop body
LE: loop exit
PB: predicated region body
PF: predicated region fallthrough
CT: control target
= control target key end

     0   :  { %s1576_s0 = inlined_call_operand.vmem [shape: f32[16,8], index: 0, kind: input, shape index: {}]   ;;  %s1577_s1 = inlined_call_operand.vmem [shape: s8[16,16], index: 1, kind: input, shape index: {}]   ;;  %s1578_s2 = inlined_call_operand.vmem [shape: f32[2,16], index: 2, kind: input, shape index: {}]   ;;  %s1579_s3 = inlined_call_operand.vmem [shape: f32[8,32], index: 3, kind: input, shape index: {}]   ;;  %s1580_s4 = inlined_call_operand.vmem [shape: bf16[32,2], index: 4, kind: input, shape index: {}]   ;;  %s1581_s5 = inlined_call_operand.vmem [shape: bf16[2,32], index: 5, kind: input, shape index: {}]   ;;  %s1582_s6 = inlined_call_operand.vmem [shape: bf16[2,32], index: 6, kind: input, shape index: {}]   ;;  %s1583_s7 = inlined_call_operand.vmem [shape: f32[1,32], index: 7, kind: input, shape index: {}]   ;;  %s1584_s8 = inlined_call_operand.vmem [shape: f32[32,32], index: 8, kind: input, shape index: {}]   ;;  %s1585_s9 = inlined_call_operand.vmem [shape: bf16[32,2], index: 9, kind: input, shape index: {}]   ;;  %s1586_s10 = inlined_call_operand.vmem [shape: bf16[2,32], index: 10, kind: input, shape index: {}]   ;;  %s1587_s11 = inlined_call_operand.vmem [shape: bf16[2,32], index: 11, kind: input, shape index: {}]   ;;  %s1588_s12 = inlined_call_operand.vmem [shape: f32[1,32], index: 12, kind: input, shape index: {}]   ;;  %s1589_s13 = inlined_call_operand.vmem [shape: f32[32,32], index: 13, kind: input, shape index: {}]   ;;  %s1590_s14 = inlined_call_operand.vmem [shape: f32[1,32], index: 14, kind: input, shape index: {}]   ;;  %s1591_s15 = inlined_call_operand.vmem [shape: f32[32,4], index: 15, kind: input, shape index: {}]   ;;  %s1592_s16 = inlined_call_operand.vmem [shape: f32[1,4], index: 16, kind: input, shape index: {}]   ;;  %s1593_s17 = inlined_call_operand.hbm [shape: f32[2,4], index: 17, kind: output, shape index: {}]  }
   0x1   :  { %1595 = sst [smem:[#allocation5_spill]] %s1576_s0 }
   0x2   :  { %1596 = sst [smem:[#allocation6_spill]] %s1577_s1 }
   0x3   :  { %v71_v0 = vld [vmem:[%s1579_s3] sm:$0xff]  ;;  %vm77_vm0 = vcmask 1043456   ;;  %s1597_s28 = sld [smem:[#allocation5_spill]]  ;;  %v1280_v3 = vmov 0.0   ;;  %vm1281_vm1 = vmmov 0   ;;  %vm73_vm2 = vcmask 64512  }
   0x4   :  { %1116 = vmatprep.subr.bf16.mxu0 %v1280_v3  ;;  %v72_v4 = vpack.c.bf16 %v71_v0, %v71_v0  ;;  %1118 = vmatprep.mubr.msk.bf16.mxu0 %vm1281_vm1, %v1280_v3 }
   0x5   :  { %1122 = vmatprep.subr.bf16.mxu1 %v1280_v3  ;;  %1126 = vmatprep.mubr.msk.bf16.mxu1 %vm1281_vm1, %v1280_v3 }
   0x6   :  { %v79_v5 = vsel %vm77_vm0, %v72_v4, 0 }
   0x7   :  { %1117 = vmatpush3.bf16.msra.mxu0 %v79_v5 }
   0x9   :  { %v68_v1 = vld [vmem:[%s1597_s28] sm:$0xff]  ;;  %v69_v2 = vld [vmem:[%s1597_s28 + $0x8] sm:$0xff] }
   0xa   :  { %v70_v6 = vpack.c.bf16 %v69_v2, %v68_v1 }
   0xb   :  { %22 = vsyncpa [#allocation3], 0  ;;  %1130 = vmatprep.subr.bf16.mxu0 %v1280_v3  ;;  %v1222_v7 = vld [vmem:[%s1580_s4 + $0x8] sm:$0xff]   ;;  %v1223_v8 = vld [vmem:[%s1580_s4] sm:$0xff]   ;;  %v1282_v9 = vmov 1   ;;  %v1283_v10 = vmov 0   ;;  %v247_v11 = vlaneseq }
   0xc   :  { %1119 = vmatmul.mubr.msk.bf16.vlgmr.msra.gmra.mxu0 %vm73_vm2, %v70_v6  ;;  %1123 = vmatpush3.bf16.msra.mxu1 %v1222_v7  ;;  %v236_v13 = vld [vmem:[%s1582_s6] sm:$0x1]  ;;  %vm139_vm3 = vcmask 261120   ;;  %s1598_s22 = sld [smem:[#allocation6_spill]]  ;;  %v1284_v53 = vmov -1e+30  }
   0xd   :  { %1132 = vmatprep.mubr.msk.bf16.mxu0 %vm1281_vm1, %v1280_v3  ;;  %1124 = vmatprep.subr.bf16.mxu1 %v1280_v3  ;;  %v1403_v12 = vshrl.u32 %v247_v11, 7  ;;  %v282_v15 = vpack.i.b16 %v236_v13, %v236_v13  ;;  %v378_v18 = vshrl.u32 %v236_v13, 16  ;;  %v184_v27 = vld [vmem:[%s1581_s5] sm:$0x1]  ;;  %vm259_vm6 = vcmask 130048   ;;  %s1285_s20 = smov [#allocation2]  }
   0xe   :  { %1218 = vset.pattern.permute.xlu1 %v1282_v9  ;;  %1217 = vset.pattern.permute.xlu0 %v1283_v10  ;;  %vm1039_vm7 = vcmask 25600  }
   0xf   :  { %v1409_v14 = vsub.s32 0, %v1403_v12  ;;  %v379_v23 = vpack.i.b16 %v378_v18, %v378_v18  ;;  %v347_v38 = vsub.s32 1, %v1403_v12 }
  0x10   :  { %1125 = vmatpush3.bf16.msra.mxu1 %v1223_v8 }
  0x11   :  { %1136 = vmatprep.subr.bf16.mxu1 %v1280_v3  ;;  %v287_v19 = vrot.slane %v282_v15, %v1409_v14  ;;  %v384_v26 = vrot.slane %v379_v23, %v1409_v14 }
  0x12   :  { %v1077_v37 = vld [vmem:[%s1598_s22] sm:$0xf]  }
  0x13   :  { %v1078_v39 = vunpack.c.0.s8 %v1077_v37  ;;  %v1079_v40 = vunpack.c.1.s8 %v1077_v37  ;;  %v435_v37 = vld [vmem:[%s1584_s8] sm:$0xff] }
  0x15   :  { %v62_v43 = vcvt.s32.f32 %v1078_v39  ;;  %v63_v46 = vcvt.s32.f32 %v1079_v40  ;;  %v436_v39 = vld [vmem:[%s1584_s8 + $0x8] sm:$0xff] }
  0x16   :  { %v439_v40 = vpack.c.bf16 %v436_v39, %v435_v37 }
  0x17   :  { %vm64_vm4 = vcmp.gt.f32.partialorder %v62_v43, 0.5  ;;  %vm65_vm5 = vcmp.gt.f32.partialorder %v63_v46, 0.5 }
  0x18   :  { %v1433_v54 = vsel %vm64_vm4, 0.0, %v1284_v53  ;;  %v1436_v62 = vsel %vm65_vm5, 0.0, %v1284_v53 }
  0xcc   :  { %v115_v16 = vpop.f32.mrf.mxu0 }
  0xce   :  { %v1120_v17 = vpop.f32.mrf.mxu0 }
  0xd0   :  { %v118_v20 = vpop.f32.mrf.mxu0 }
  0xd1   :  { %v122_v21 = vpack.c.bf16 %v118_v20, %v115_v16 }
  0xd2   :  { %v1121_v22 = vpop.f32.mrf.mxu0 }
  0xd3   :  { %1127 = vmatmul.mubr.msk.bf16.vlgmr.msra.gmra.mxu1 %vm139_vm3, %v122_v21  ;;  %v141_v24 = vsel %vm139_vm3, %v122_v21, 0  ;;  %v288_v25 = vmul.bf16 %v287_v19, %v122_v21  ;;  %v385_v28 = vmul.bf16 %v384_v26, %v122_v21 }
  0xd4   :  { %1131 = vmatpush3.bf16.xpose.msra.mxu0 %v141_v24  ;;  %1138 = vmatprep.mubr.msk.bf16.mxu1 %vm1281_vm1, %v1280_v3 }
  0xd5   :  { %1137 = vmatpush3.bf16.msra.mxu1 %v288_v25  ;;  %1142 = vmatprep.subr.bf16.mxu0 %v1280_v3 }
  0xd6   :  { %1148 = vmatprep.subr.bf16.mxu1 %v1280_v3 }
  0xdb   :  { %1133 = vmatmul.mubr.msk.bf16.vlgmr.msra.gmra.mxu0 %vm139_vm3, %v184_v27 }
  0xdc   :  { %1143 = vmatpush3.bf16.msra.mxu0 %v385_v28  ;;  %1144 = vmatprep.mubr.msk.bf16.mxu0 %vm1281_vm1, %v1280_v3 }
  0xdd   :  { %1156 = vmatprep.subr.bf16.mxu0 %v1280_v3 }
 0x193   :  { %v177_v29 = vpop.f32.mrf.mxu1 }
 0x194   :  { %338 = vperm.xlu1 %1218, %v177_v29   ;;  %239 = vperm.xlu0 %1217, %v177_v29  }
 0x195   :  { %v1128_v30 = vpop.f32.mrf.mxu1 }
 0x197   :  { %v180_v31 = vpop.f32.mrf.mxu1 }
 0x198   :  { %342 = vperm.xlu1 %1218, %v180_v31   ;;  %244 = vperm.xlu0 %1217, %v180_v31  }
 0x199   :  { %v1129_v32 = vpop.f32.mrf.mxu1 }
 0x19b   :  { %v222_v33 = vpop.f32.mrf.mxu0 }
 0x19c   :  { %1219 = vset.pattern.permute.xlu1 %v1283_v10  ;;  %v250_v41 = vrot.slane %v222_v33, %v1409_v14  ;;  %v348_v42 = vrot.slane %v222_v33, %v347_v38 }
 0x19d   :  { %v1134_v34 = vpop.f32.mrf.mxu0 }
 0x19e   :  { %v437_v34 = vld [vmem:[%s1584_s8 + $0x10] sm:$0xff] }
 0x19f   :  { %v225_v35 = vpop.f32.mrf.mxu0 }
 0x1a0   :  { %v438_v35 = vld [vmem:[%s1584_s8 + $0x18] sm:$0xff] }
 0x1a1   :  { %v1135_v36 = vpop.f32.mrf.mxu0 }
 0x1a2   :  { %v440_v36 = vpack.c.bf16 %v438_v35, %v437_v34 }
 0x20f   :  { %v339_v44 = vpop.permute.xlu1 %338  ;;  %v240_v45 = vpop.permute.xlu0 %239 }
 0x210   :  { %v349_v47 = vadd.f32 %v348_v42, %v339_v44  ;;  %v251_v48 = vadd.f32 %v250_v41, %v240_v45 }
 0x212   :  { %v351_v49 = vmul.f32 0.2, %v349_v47  ;;  %v253_v50 = vmul.f32 0.2, %v251_v48 }
 0x213   :  { %v343_v51 = vpop.permute.xlu1 %342  ;;  %v245_v52 = vpop.permute.xlu0 %244 }
 0x214   :  { %v353_v55 = vmax.f32 %v349_v47, %v351_v49  ;;  %v255_v56 = vmax.f32 %v251_v48, %v253_v50  ;;  %v350_v57 = vadd.f32 %v348_v42, %v343_v51  ;;  %v252_v58 = vadd.f32 %v250_v41, %v245_v52 }
 0x216   :  { %v352_v59 = vmul.f32 0.2, %v350_v57  ;;  %v254_v60 = vmul.f32 0.2, %v252_v58  ;;  %v257_v61 = vadd.f32 %v255_v56, %v1433_v54  ;;  %v355_v2 = vadd.f32 %v353_v55, %v1433_v54  ;;  %v1060_v55 = vld [vmem:[%s1583_s7] ss:$0 sm:$0xff] }
 0x218   :  { %v354_v63 = vmax.f32 %v350_v57, %v352_v59  ;;  %v256_v0 = vmax.f32 %v252_v58, %v254_v60  ;;  %v260_v1 = vsel %vm259_vm6, %v257_v61, -inf  ;;  %v357_v6 = vsel %vm259_vm6, %v355_v2, -inf }
 0x219   :  { %261 = vmax.xlane.f32.xlu0 %v260_v1 }
 0x21a   :  { %v258_v4 = vadd.f32 %v256_v0, %v1436_v62  ;;  %v356_v7 = vadd.f32 %v354_v63, %v1436_v62 }
 0x21c   :  { %v263_v5 = vsel %vm259_vm6, %v258_v4, -inf  ;;  %v360_v8 = vsel %vm259_vm6, %v356_v7, -inf }
 0x21d   :  { %264 = vmax.xlane.f32.xlu1 %v263_v5  ;;  %358 = vmax.xlane.f32.xlu0 %v357_v6  ;;  %v1224_v6 = vld [vmem:[%s1585_s9 + $0x8] sm:$0xff]  }
 0x221   :  { %361 = vmax.xlane.f32.xlu0 %v360_v8  ;;  %v598_v8 = vld [vmem:[%s1587_s11] sm:$0x1] }
 0x2a2   :  { %v262_v10 = vpop.xlane.xlu0 %261 }
 0x2a3   :  { %v266_v11 = vsub.f32 %v257_v61, %v262_v10  ;;  %v643_v10 = vpack.i.b16 %v598_v8, %v598_v8 }
 0x2a5   :  { %v268_v13 = vmul.f32 1.442695, %v266_v11 }
 0x2a6   :  { %v265_v15 = vpop.xlane.xlu1 %264  ;;  %v359_v16 = vpop.xlane.xlu0 %358 }
 0x2a7   :  { %1226 = vpow2.f32 %v268_v13  ;;  %v267_v17 = vsub.f32 %v258_v4, %v265_v15  ;;  %v363_v18 = vsub.f32 %v355_v2, %v359_v16  ;;  %v739_v15 = vshrl.u32 %v598_v8, 16 }
 0x2a8   :  { %v648_v16 = vrot.slane %v643_v10, %v1409_v14 }
 0x2a9   :  { %v270_v19 = vmul.f32 1.442695, %v267_v17  ;;  %v365_v20 = vmul.f32 1.442695, %v363_v18 }
 0x2aa   :  { %v362_v21 = vpop.xlane.xlu0 %361 }
 0x2ab   :  { %1228 = vpow2.f32 %v270_v19  ;;  %v364_v22 = vsub.f32 %v356_v7, %v362_v21  ;;  %v1225_v7 = vld [vmem:[%s1585_s9] sm:$0xff]  }
 0x2ac   :  { %1230 = vpow2.f32 %v365_v20  ;;  %v740_v20 = vpack.i.b16 %v739_v15, %v739_v15 }
 0x2ad   :  { %v367_v23 = vmul.f32 1.442695, %v364_v22 }
 0x2af   :  { %1232 = vpow2.f32 %v367_v23  ;;  %v745_v23 = vrot.slane %v740_v20, %v1409_v14  ;;  %v871_v20 = vld [vmem:[%s1589_s13 + $0x10] sm:$0xff] }
 0x2b4   :  { %v1227_v24 = vpop.eup %1226 }
 0x2b5   :  { %v272_v25 = vsel %vm259_vm6, %v1227_v24, 0.0 }
 0x2b6   :  { %273 = vadd.xlane.f32.xlu1 %v272_v25 }
 0x2b8   :  { %v1229_v26 = vpop.eup %1228 }
 0x2b9   :  { %v1231_v27 = vpop.eup %1230  ;;  %v275_v28 = vsel %vm259_vm6, %v1229_v26, 0.0  ;;  %v280_v29 = vpack.c.bf16 %v1229_v26, %v1227_v24  ;;  %v546_v24 = vld [vmem:[%s1586_s10] sm:$0x1] }
 0x2ba   :  { %276 = vadd.xlane.f32.xlu0 %v275_v28  ;;  %v369_v30 = vsel %vm259_vm6, %v1231_v27, 0.0 }
 0x2bb   :  { %370 = vadd.xlane.f32.xlu1 %v369_v30  ;;  %1139 = vmatmul.mubr.msk.bf16.vlgmr.msra.gmra.mxu1 %vm259_vm6, %v280_v29 }
 0x2bc   :  { %v1233_v31 = vpop.eup %1232  ;;  %1152 = vmatprep.mubr.msk.bf16.mxu1 %vm1281_vm1, %v1280_v3  ;;  %1149 = vmatpush3.bf16.msra.mxu1 %v440_v36 }
 0x2bd   :  { %v372_v32 = vsel %vm259_vm6, %v1233_v31, 0.0  ;;  %v377_v33 = vpack.c.bf16 %v1233_v31, %v1231_v27  ;;  %1150 = vmatprep.subr.bf16.mxu1 %v1280_v3 }
 0x2be   :  { %373 = vadd.xlane.f32.xlu0 %v372_v32 }
 0x2bf   :  { %1145 = vmatmul.mubr.msk.bf16.vlgmr.msra.gmra.mxu0 %vm259_vm6, %v377_v33 }
 0x2c0   :  { %1160 = vmatprep.mubr.msk.bf16.mxu0 %vm1281_vm1, %v1280_v3  ;;  %1151 = vmatpush3.bf16.msra.mxu1 %v439_v40 }
 0x2c1   :  { %1164 = vmatprep.subr.bf16.mxu1 %v1280_v3  ;;  %1157 = vmatpush3.bf16.msra.mxu0 %v1224_v6 }
 0x2c2   :  { %1158 = vmatprep.subr.bf16.mxu0 %v1280_v3 }
 0x2c5   :  { %1159 = vmatpush3.bf16.msra.mxu0 %v1225_v7 }
 0x2c6   :  { %1170 = vmatprep.subr.bf16.mxu0 %v1280_v3 }
 0x33f   :  { %v274_v41 = vpop.xlane.xlu1 %273 }
 0x340   :  { %1234 = vrcp.f32 %v274_v41 }
 0x343   :  { %v277_v42 = vpop.xlane.xlu0 %276 }
 0x344   :  { %v371_v43 = vpop.xlane.xlu1 %370  ;;  %1236 = vrcp.f32 %v277_v42 }
 0x345   :  { %1238 = vrcp.f32 %v371_v43 }
 0x347   :  { %v374_v44 = vpop.xlane.xlu0 %373 }
 0x348   :  { %1240 = vrcp.f32 %v374_v44 }
 0x34d   :  { %v1235_v47 = vpop.eup %1234 }
 0x351   :  { %v1237_v48 = vpop.eup %1236 }
 0x352   :  { %v1239_v53 = vpop.eup %1238 }
 0x355   :  { %v1241_v59 = vpop.eup %1240 }
 0x37b   :  { %v326_v45 = vpop.f32.mrf.mxu1 }
 0x37c   :  { %v333_v51 = vmul.f32 %v1235_v47, %v326_v45 }
 0x37d   :  { %v1140_v46 = vpop.f32.mrf.mxu1 }
 0x37e   :  { %v335_v61 = vadd.f32 %v1060_v55, %v333_v51 }
 0x37f   :  { %v329_v49 = vpop.f32.mrf.mxu1  ;;  %v423_v50 = vpop.f32.mrf.mxu0 }
 0x380   :  { %v334_v52 = vmul.f32 %v1237_v48, %v329_v49  ;;  %v430_v58 = vmul.f32 %v1239_v53, %v423_v50 }
 0x381   :  { %v1141_v56 = vpop.f32.mrf.mxu1  ;;  %v1146_v57 = vpop.f32.mrf.mxu0 }
 0x382   :  { %v336_v63 = vadd.f32 %v1060_v55, %v334_v52  ;;  %v432_v2 = vadd.f32 %v430_v58, %v335_v61 }
 0x383   :  { %v426_v60 = vpop.f32.mrf.mxu0 }
 0x384   :  { %v431_v0 = vmul.f32 %v1241_v59, %v426_v60 }
 0x385   :  { %v1147_v1 = vpop.f32.mrf.mxu0 }
 0x386   :  { %v433_v4 = vadd.f32 %v431_v0, %v336_v63 }
 0x388   :  { %v434_v5 = vpack.c.bf16 %v433_v4, %v432_v2 }
 0x38a   :  { %1153 = vmatmul.mubr.msk.bf16.vlgmr.msra.gmra.mxu1 %vm139_vm3, %v434_v5 }
 0x38b   :  { %1166 = vmatprep.mubr.msk.bf16.mxu1 %vm1281_vm1, %v1280_v3 }
 0x44a   :  { %v478_v11 = vpop.f32.mrf.mxu1 }
 0x44c   :  { %v1154_v13 = vpop.f32.mrf.mxu1 }
 0x44e   :  { %v481_v17 = vpop.f32.mrf.mxu1 }
 0x44f   :  { %v485_v18 = vpack.c.bf16 %v481_v17, %v478_v11 }
 0x450   :  { %v1155_v19 = vpop.f32.mrf.mxu1 }
 0x451   :  { %1161 = vmatmul.mubr.msk.bf16.vlgmr.msra.gmra.mxu0 %vm139_vm3, %v485_v18  ;;  %v503_v21 = vsel %vm139_vm3, %v485_v18, 0  ;;  %v649_v22 = vmul.bf16 %v648_v16, %v485_v18  ;;  %v746_v25 = vmul.bf16 %v745_v23, %v485_v18  ;;  %v872_v19 = vld [vmem:[%s1589_s13 + $0x18] sm:$0xff] }
 0x452   :  { %1165 = vmatpush3.bf16.xpose.msra.mxu1 %v503_v21  ;;  %1172 = vmatprep.mubr.msk.bf16.mxu0 %vm1281_vm1, %v1280_v3  ;;  %v870_v21 = vld [vmem:[%s1589_s13 + $0x8] sm:$0xff] }
 0x453   :  { %1171 = vmatpush3.bf16.msra.mxu0 %v649_v22  ;;  %1176 = vmatprep.subr.bf16.mxu1 %v1280_v3 }
 0x454   :  { %1182 = vmatprep.subr.mxu0 %v1280_v3 }
 0x459   :  { %1167 = vmatmul.mubr.msk.bf16.vlgmr.msra.gmra.mxu1 %vm139_vm3, %v546_v24 }
 0x45a   :  { %1177 = vmatpush3.bf16.msra.mxu1 %v746_v25  ;;  %1178 = vmatprep.mubr.msk.bf16.mxu1 %vm1281_vm1, %v1280_v3 }
 0x45b   :  { %1189 = vmatprep.subr.mxu1 %v1280_v3 }
 0x511   :  { %v539_v26 = vpop.f32.mrf.mxu0 }
 0x512   :  { %601 = vperm.xlu1 %1219, %v539_v26  }
 0x513   :  { %v1162_v27 = vpop.f32.mrf.mxu0 }
 0x515   :  { %v542_v28 = vpop.f32.mrf.mxu0 }
 0x516   :  { %1220 = vset.pattern.permute.xlu1 %v1282_v9  ;;  %606 = vperm.xlu0 %1217, %v542_v28  }
 0x517   :  { %699 = vperm.xlu1 %1220, %v539_v26   ;;  %v1163_v29 = vpop.f32.mrf.mxu0 }
 0x519   :  { %v584_v30 = vpop.f32.mrf.mxu1 }
 0x51a   :  { %1221 = vset.pattern.permute.xlu0 %v1282_v9  ;;  %v612_v34 = vrot.slane %v584_v30, %v1409_v14  ;;  %v709_v39 = vrot.slane %v584_v30, %v347_v38 }
 0x51b   :  { %703 = vperm.xlu1 %1220, %v542_v28   ;;  %v1168_v31 = vpop.f32.mrf.mxu1 }
 0x51d   :  { %v587_v32 = vpop.f32.mrf.mxu1 }
 0x51f   :  { %v1169_v33 = vpop.f32.mrf.mxu1 }
 0x58d   :  { %v602_v35 = vpop.permute.xlu1 %601 }
 0x58e   :  { %v613_v36 = vadd.f32 %v612_v34, %v602_v35 }
 0x590   :  { %v615_v37 = vmul.f32 0.2, %v613_v36 }
 0x591   :  { %v607_v40 = vpop.permute.xlu0 %606 }
 0x592   :  { %v617_v41 = vmax.f32 %v613_v36, %v615_v37  ;;  %v614_v42 = vadd.f32 %v612_v34, %v607_v40  ;;  %v700_v43 = vpop.permute.xlu1 %699 }
 0x593   :  { %v710_v44 = vadd.f32 %v709_v39, %v700_v43 }
 0x594   :  { %v616_v45 = vmul.f32 0.2, %v614_v42  ;;  %v619_v9 = vadd.f32 %v617_v41, %v1433_v54 }
 0x595   :  { %v712_v46 = vmul.f32 0.2, %v710_v44 }
 0x596   :  { %v618_v47 = vmax.f32 %v614_v42, %v616_v45  ;;  %v704_v48 = vpop.permute.xlu1 %703  ;;  %v621_v49 = vsel %vm259_vm6, %v619_v9, -inf }
 0x597   :  { %v714_v14 = vmax.f32 %v710_v44, %v712_v46  ;;  %v711_v50 = vadd.f32 %v709_v39, %v704_v48  ;;  %622 = vmax.xlane.f32.xlu0 %v621_v49  ;;  %v1068_v39 = vld [vmem:[%s1588_s12] ss:$0 sm:$0xff]  ;;  %v957_v49 = vld [vmem:[%s1591_s15 + $0x18] sm:$0xff] }
 0x598   :  { %v620_v51 = vadd.f32 %v618_v47, %v1436_v62  ;;  %v795_v47 = vld [vmem:[%s1578_s2] sm:$0x3] }
 0x599   :  { %v713_v12 = vmul.f32 0.2, %v711_v50  ;;  %v716_v38 = vadd.f32 %v714_v14, %v1433_v54  ;;  %v869_v48 = vld [vmem:[%s1589_s13] sm:$0xff] }
 0x59a   :  { %v624_v52 = vsel %vm259_vm6, %v620_v51, -inf }
 0x59b   :  { %v715_v53 = vmax.f32 %v711_v50, %v713_v12  ;;  %625 = vmax.xlane.f32.xlu1 %v624_v52  ;;  %v718_v55 = vsel %vm259_vm6, %v716_v38, -inf  ;;  %v955_v12 = vld [vmem:[%s1591_s15 + $0x8] sm:$0xff]  ;;  %v1072_v52 = vld [vmem:[%s1590_s14] ss:$0 sm:$0xff] }
 0x59c   :  { %719 = vmax.xlane.f32.xlu0 %v718_v55 }
 0x59d   :  { %v717_v56 = vadd.f32 %v715_v53, %v1436_v62 }
 0x59f   :  { %v721_v57 = vsel %vm259_vm6, %v717_v56, -inf }
 0x5a0   :  { %722 = vmax.xlane.f32.xlu0 %v721_v57 }
 0x620   :  { %v623_v58 = vpop.xlane.xlu0 %622 }
 0x621   :  { %v627_v59 = vsub.f32 %v619_v9, %v623_v58  ;;  %v1074_v58 = vld [vmem:[%s1592_s16] ss:$0 sm:$0xff] }
 0x623   :  { %v629_v60 = vmul.f32 1.442695, %v627_v59 }
 0x624   :  { %v626_v61 = vpop.xlane.xlu1 %625 }
 0x625   :  { %1242 = vpow2.f32 %v629_v60  ;;  %v628_v63 = vsub.f32 %v620_v51, %v626_v61  ;;  %v720_v0 = vpop.xlane.xlu0 %719  ;;  %v956_v51 = vld [vmem:[%s1591_s15 + $0x10] sm:$0xff] }
 0x626   :  { %v724_v54 = vsub.f32 %v716_v38, %v720_v0  ;;  %v954_v38 = vld [vmem:[%s1591_s15] sm:$0xff]  ;;  %s1047_s15 = sshll.u32 %s1285_s20, 4  ;;  %s1048_s15 = int_to_ptr.vmem [resolvable:$true] %s1047_s15 }
 0x627   :  { %v631_v1 = vmul.f32 1.442695, %v628_v63  ;;  %s1258_s14 = scalar_lea.vmem %s1048_s15, 32  ;;  %p1263_p1 = scmp.lt.s32.totalorder %s1048_s15, %s1048_s15 }
 0x628   :  { %v726_v2 = vmul.f32 1.442695, %v724_v54  ;;  %p1259_p0 = scmp.ne.s32.totalorder %s1048_s15, %s1258_s14  ;;  %p1264_p2 = scmp.lt.s32.totalorder %s1258_s14, %s1258_s14 }
 0x629   :  { %1244 = vpow2.f32 %v631_v1  ;;  %v723_v4 = vpop.xlane.xlu0 %722 }
 0x62a   :  { %1246 = vpow2.f32 %v726_v2  ;;  %v725_v5 = vsub.f32 %v717_v56, %v723_v4  ;;  %p1265_p3 = por %p1264_p2, %p1263_p1 }
 0x62c   :  { %v728_v6 = vmul.f32 1.442695, %v725_v5  ;;  %p1266_p4 = pnand %p1265_p3, %p1259_p0 }
 0x62e   :  { %1248 = vpow2.f32 %v728_v6 }
 0x632   :  { %v1243_v62 = vpop.eup %1242 }
 0x633   :  { %v633_v7 = vsel %vm259_vm6, %v1243_v62, 0.0 }
 0x634   :  { %634 = vadd.xlane.f32.xlu0 %v633_v7 }
 0x636   :  { %v1245_v8 = vpop.eup %1244 }
 0x637   :  { %v1247_v10 = vpop.eup %1246  ;;  %v636_v11 = vsel %vm259_vm6, %v1245_v8, 0.0  ;;  %v641_v13 = vpack.c.bf16 %v1245_v8, %v1243_v62 }
 0x638   :  { %637 = vadd.xlane.f32.xlu1 %v636_v11  ;;  %v730_v15 = vsel %vm259_vm6, %v1247_v10, 0.0 }
 0x639   :  { %1173 = vmatmul.mubr.msk.bf16.vlgmr.msra.gmra.mxu0 %vm259_vm6, %v641_v13  ;;  %731 = vadd.xlane.f32.xlu0 %v730_v15 }
 0x63a   :  { %1186 = vmatprep.mubr.msk.f32.mxu0 %vm1281_vm1, %v1280_v3 }
 0x63b   :  { %v1249_v16 = vpop.eup %1248 }
 0x63c   :  { %v733_v17 = vsel %vm259_vm6, %v1249_v16, 0.0  ;;  %v738_v18 = vpack.c.bf16 %v1249_v16, %v1247_v10 }
 0x63d   :  { %734 = vadd.xlane.f32.xlu1 %v733_v17 }
 0x63e   :  { %1179 = vmatmul.mubr.msk.bf16.vlgmr.msra.gmra.mxu1 %vm259_vm6, %v738_v18 }
 0x63f   :  { %1197 = vmatprep.mubr.msk.f32.mxu1 %vm1281_vm1, %v1280_v3  ;;  %1190 = vmatpush3.msra.mxu1 %v872_v19 }
 0x640   :  { %1191 = vmatprep.subr.mxu1 %v1280_v3 }
 0x641   :  { %1192 = vmatpush3.msra.mxu1 %v871_v20 }
 0x642   :  { %1193 = vmatprep.subr.mxu1 %v1280_v3 }
 0x643   :  { %1194 = vmatpush3.msra.mxu1 %v870_v21 }
 0x644   :  { %1195 = vmatprep.subr.mxu1 %v1280_v3 }
 0x645   :  { %1196 = vmatpush3.msra.mxu1 %v869_v48 }
 0x6bd   :  { %v635_v22 = vpop.xlane.xlu0 %634 }
 0x6c1   :  { %v638_v23 = vpop.xlane.xlu1 %637 }
 0x6c2   :  { %1250 = vrcp.f32 %v638_v23  ;;  %v732_v24 = vpop.xlane.xlu0 %731 }
 0x6c3   :  { %1252 = vrcp.f32 %v635_v22 }
 0x6c4   :  { %1254 = vrcp.f32 %v732_v24 }
 0x6c6   :  { %v735_v25 = vpop.xlane.xlu1 %734 }
 0x6c7   :  { %1256 = vrcp.f32 %v735_v25 }
 0x6cf   :  { %v1251_v29 = vpop.eup %1250 }
 0x6d0   :  { %v1253_v33 = vpop.eup %1252 }
 0x6d1   :  { %v1255_v35 = vpop.eup %1254 }
 0x6d4   :  { %v1257_v37 = vpop.eup %1256 }
 0x6f9   :  { %v687_v26 = vpop.f32.mrf.mxu0 }
 0x6fa   :  { %v694_v36 = vmul.f32 %v1253_v33, %v687_v26 }
 0x6fb   :  { %v1174_v27 = vpop.f32.mrf.mxu0 }
 0x6fc   :  { %v696_v45 = vadd.f32 %v1068_v39, %v694_v36 }
 0x6fd   :  { %v690_v28 = vpop.f32.mrf.mxu0 }
 0x6fe   :  { %v784_v30 = vpop.f32.mrf.mxu1  ;;  %v695_v31 = vmul.f32 %v1251_v29, %v690_v28 }
 0x6ff   :  { %v1175_v32 = vpop.f32.mrf.mxu0  ;;  %v791_v42 = vmul.f32 %v1255_v35, %v784_v30 }
 0x700   :  { %v1180_v34 = vpop.f32.mrf.mxu1  ;;  %v697_v41 = vadd.f32 %v1068_v39, %v695_v31 }
 0x701   :  { %v793_v46 = vadd.f32 %v791_v42, %v696_v45 }
 0x702   :  { %v787_v40 = vpop.f32.mrf.mxu1 }
 0x703   :  { %v792_v43 = vmul.f32 %v1257_v37, %v787_v40 }
 0x704   :  { %v1181_v44 = vpop.f32.mrf.mxu1 }
 0x705   :  { %v794_v9 = vadd.f32 %v792_v43, %v697_v41 }
 0x707   :  { %1183 = vmatpush3.msra.mxu0 %v794_v9 }
 0x708   :  { %1184 = vmatprep.subr.mxu0 %v1280_v3 }
 0x709   :  { %1185 = vmatpush3.msra.mxu0 %v793_v46 }
 0x70a   :  { %1187 = vmatmul.mubr.msk.f32.vlgmr.msra.gmra.mxu0 %vm259_vm6, %v795_v47  ;;  %1200 = vmatprep.subr.mxu0 %v1280_v3 }
 0x70b   :  { %1208 = vmatprep.mubr.msk.f32.mxu0 %vm1281_vm1, %v1280_v3  ;;  %1201 = vmatpush3.msra.mxu0 %v957_v49 }
 0x70c   :  { %1202 = vmatprep.subr.mxu0 %v1280_v3 }
 0x70d   :  { %1203 = vmatpush3.msra.mxu0 %v956_v51 }
 0x70e   :  { %1204 = vmatprep.subr.mxu0 %v1280_v3 }
 0x70f   :  { %1205 = vmatpush3.msra.mxu0 %v955_v12 }
 0x710   :  { %1206 = vmatprep.subr.mxu0 %v1280_v3 }
 0x711   :  { %1207 = vmatpush3.msra.mxu0 %v954_v38 }
 0x7ca   :  { %v865_v14 = vpop.f32.mrf.mxu0 }
 0x7cb   :  { %1198 = vmatmul.mubr.msk.f32.vlgmr.msra.gmra.mxu1 %vm139_vm3, %v865_v14 }
 0x7cc   :  { %v1188_v50 = vpop.f32.mrf.mxu0 }
 0x88b   :  { %v949_v53 = vpop.f32.mrf.mxu1 }
 0x88c   :  { %v950_v55 = vadd.f32 %v1072_v52, %v949_v53 }
 0x88d   :  { %v1199_v56 = vpop.f32.mrf.mxu1 }
 0x88e   :  { %v953_v57 = vmax.f32 %v950_v55, 0.0 }
 0x890   :  { %1209 = vmatmul.mubr.msk.f32.vlgmr.msra.gmra.mxu0 %vm139_vm3, %v953_v57 }
 0x950   :  { %v1034_v59 = vpop.f32.mrf.mxu0 }
 0x951   :  { %v1035_v60 = vadd.f32 %v1074_v58, %v1034_v59 }
 0x952   :  { %v1210_v3 = vpop.f32.mrf.mxu0 }
 0x953   :  { %v1038_v61 = vmax.f32 %v1035_v60, 0.0 }
 0x955   :  { %1040 = vst.msk [vmem:[#allocation2] sm:$0x3] %vm1039_vm7, %v1038_v61 }
 0x956   :  { %1269 = shalt.err (!%p1266_p4)
}
 0x957   :  { %1050 = dma.vmem_to_hbm [thread:$0]  %s1048_s15, 32, %s1593_s17, [#allocation3]  }
 0x958   :  { %1278 = dma.done.wait [#allocation3], 32  }
 0x959   :  { %1279 = vsyncadd [#allocation3], 4294967264 }
 0x95a   :  { %1054 = vsyncpa [#allocation3], 1 }

</bundles_post_ra>
